<compile_context>
chip_gen: v7x
topology: tpu7x:2x2x1
jax: 0.10.0
libtpu: 0.0.40
codegen_flags: <defaults>
</compile_context>

<pallas_src>
import functools

import jax
import jax.numpy as jnp
from jax.experimental import pallas as pl
from jax.experimental.pallas import tpu as pltpu

EPS = 1e-5


def _round_up(x, m):
    return ((x + m - 1) // m) * m


def _prenorm_kernel(x_ref, w_ref, wb_ref, o_ref, *, c_real, compute_dtype):
    # x_ref: (TILE, Cp)   w_ref: (Cp, Cp) compute_dtype   wb_ref: (1, Cp) f32
    x = x_ref[...].astype(jnp.float32)

    # LayerNorm stats over the channel (lane) dim.  Padded lanes of x are zero,
    # so plain sums over Cp lanes equal sums over the C real channels -> no
    # lane mask / select pass.  E[x^2]-mean^2 keeps the two reductions
    # independent so they can overlap on the XLU.
    inv_c = jnp.float32(1.0 / c_real)
    mean = jnp.sum(x, axis=-1, keepdims=True) * inv_c
    ex2 = jnp.sum(x * x, axis=-1, keepdims=True) * inv_c
    var = ex2 - mean * mean
    inv = jax.lax.rsqrt(var + EPS)
    xhat = (x - mean) * inv

    # fn = 1x1 Conv2d with the LN affine pre-folded into (w, wb) by the
    # wrapper: out = xhat @ W' + bias'.  Padded input-rows of W' are exactly
    # zero, so padded lanes of xhat contribute nothing.
    out = jnp.dot(xhat.astype(compute_dtype), w_ref[...],
                  preferred_element_type=jnp.float32)
    out = out + wb_ref[...]
    o_ref[...] = out.astype(o_ref.dtype)


def prenorm_pallas(x_nchw, g, b, conv_w, conv_b, *, compute_dtype=jnp.bfloat16):
    """x_nchw: (B, C, H, W). g, b: (1, C, 1, 1). conv_w: (C, C, 1, 1). conv_b: (C,)."""
    B, C, H, W = x_nchw.shape
    rows = B * H * W
    x_dtype = x_nchw.dtype
    x_bytes = jnp.dtype(x_dtype).itemsize
    w_bytes = jnp.dtype(compute_dtype).itemsize

    # Lane-dense channel dim (multiple of 128, no further padding).
    Cp = _round_up(max(C, 128), 128)

    # Row granularity matches sublane packing (f32: 8, bf16: 16) so stores stay
    # unmasked / unpacked.
    row_gran = max(8, 32 // x_bytes)

    # ---- VMEM budget (sized for v7x's 64 MiB per-TC VMEM, with headroom) ----
    # Resident: double-buffered x/out tiles, the (Cp, Cp) weight (x2 buffers),
    # the bias row, plus f32 in-kernel temporaries.
    budget = 40 << 20
    const_bytes = 2 * Cp * Cp * w_bytes + 2 * Cp * 4 + (1 << 20)
    per_row = 4 * Cp * x_bytes + 3 * Cp * 4
    tile_cap = (budget - const_bytes) // per_row
    tile_cap = max(row_gran, (tile_cap // row_gran) * row_gran)
    tile_cap = min(tile_cap, 512)

    # ---- Row tiling ----------------------------------------------------------
    # >= 4 grid steps when rows allow (>= 2 per TensorCore on v7x), always an
    # even step count so the "parallel" axis splits evenly across the 2 TCs,
    # tile sized from the row count to minimize padded-row waste.
    min_useful_tile = 8 * row_gran
    steps = max(1, pl.cdiv(rows, tile_cap))
    if rows // 4 >= min_useful_tile:
        steps = max(steps, 4)
    if steps > 1:
        steps = _round_up(steps, 2)
    tile = min(_round_up(pl.cdiv(rows, steps), row_gran), tile_cap)
    steps = pl.cdiv(rows, tile)
    if steps > 1:
        steps = _round_up(steps, 2)
    padded_rows = steps * tile
    grid = (steps,)

    # NCHW -> (rows, C), then zero-pad rows/channels.  (Padded rows normalize
    # an all-zero vector -> finite values, sliced off below.)
    x2d = jnp.transpose(x_nchw, (0, 2, 3, 1)).reshape(rows, C)
    x2d = jnp.pad(x2d, ((0, padded_rows - rows), (0, Cp - C)))

    # Fold the LN affine into the conv weights/bias (f32, exact precision):
    #   out = (xhat * g + b) @ Wt + cb  ==  xhat @ (g[:, None] * Wt) + (b @ Wt + cb)
    # with Wt[i, o] = conv_w[o, i].
    wt = conv_w.reshape(C, C).astype(jnp.float32).T
    w_fold = g.reshape(C, 1).astype(jnp.float32) * wt
    wb_fold = (jnp.dot(b.reshape(1, C).astype(jnp.float32), wt,
                       precision=jax.lax.Precision.HIGHEST)
               + conv_b.reshape(1, C).astype(jnp.float32))
    # Pad AFTER folding so padded rows/cols of W' and bias' stay exactly zero.
    w_mat = jnp.pad(w_fold, ((0, Cp - C), (0, Cp - C))).astype(compute_dtype)
    wb2d = jnp.pad(wb_fold, ((0, 0), (0, Cp - C)))

    est = const_bytes + per_row * tile
    vmem_limit = int(min(48 << 20, max(2 * est, 32 << 20)))

    kernel = functools.partial(_prenorm_kernel, c_real=C,
                               compute_dtype=compute_dtype)

    out2d = pl.pallas_call(
        kernel,
        out_shape=jax.ShapeDtypeStruct((padded_rows, Cp), x_dtype),
        grid_spec=pltpu.PrefetchScalarGridSpec(
            num_scalar_prefetch=0,
            grid=grid,
            in_specs=[
                pl.BlockSpec((tile, Cp), lambda i: (i, 0)),   # x rows
                pl.BlockSpec((Cp, Cp), lambda i: (0, 0)),     # folded conv W
                pl.BlockSpec((1, Cp), lambda i: (0, 0)),      # folded bias
            ],
            out_specs=pl.BlockSpec((tile, Cp), lambda i: (i, 0)),
        ),
        compiler_params=pltpu.CompilerParams(
            dimension_semantics=("parallel",),
            vmem_limit_bytes=vmem_limit),
    )(x2d, w_mat, wb2d)

    out2d = out2d[:rows, :C]
    # (rows, C) -> NCHW
    return jnp.transpose(out2d.reshape(B, H, W, C), (0, 3, 1, 2))


def prenorm_reference(x_nchw, g, b, conv_w, conv_b):
    x = x_nchw.astype(jnp.float32)
    mean = jnp.mean(x, axis=1, keepdims=True)
    var = jnp.mean((x - mean) ** 2, axis=1, keepdims=True)
    y = (x - mean) / jnp.sqrt(var + EPS) * g + b
    out = jnp.einsum("nchw,oc->nohw", y,
                     conv_w.reshape(conv_w.shape[0], conv_w.shape[1]),
                     precision=jax.lax.Precision.HIGHEST)
    out = out + conv_b.reshape(1, -1, 1, 1)
    return out.astype(x_nchw.dtype)


if __name__ == "__main__":
    key = jax.random.PRNGKey(0)
    kx, kw, kb, kg, kbeta = jax.random.split(key, 5)

    B, C, H, W = 2, 4, 16, 16
    x = jax.random.normal(kx, (B, C, H, W), dtype=jnp.float32)

    # LayerNorm params (perturbed from the ones/zeros init so the affine->conv
    # fold is actually exercised by the check).
    g = 1.0 + 0.1 * jax.random.normal(kg, (1, C, 1, 1), dtype=jnp.float32)
    b = 0.1 * jax.random.normal(kbeta, (1, C, 1, 1), dtype=jnp.float32)

    # Deterministic synthetic fn = Conv2d(C, C, kernel_size=1)
    conv_w = 0.1 * jax.random.normal(kw, (C, C, 1, 1), dtype=jnp.float32)
    conv_b = 0.1 * jax.random.normal(kb, (C,), dtype=jnp.float32)

    ref = prenorm_reference(x, g, b, conv_w, conv_b)

    # Near-exact path (f32 matmul): differs from the two-pass-variance
    # reference only by f32 rounding (E[x^2]-mean^2 form).
    out_f32 = prenorm_pallas(x, g, b, conv_w, conv_b, compute_dtype=jnp.float32)
    out_f32 = jax.block_until_ready(out_f32)
    assert out_f32.shape == (B, C, H, W)
    assert jnp.allclose(out_f32, ref, atol=1e-4, rtol=1e-4), \
        "f32 path mismatch vs reference"

    # Default fast path (bf16 MXU matmul, f32 accumulation): looser tolerance.
    out = prenorm_pallas(x, g, b, conv_w, conv_b)
    out = jax.block_until_ready(out)
    assert out.shape == (B, C, H, W)
    assert jnp.allclose(out, ref, atol=3e-2, rtol=3e-2), \
        "bf16 path mismatch vs reference"

    print("KERNEL_OK")
</pallas_src>

<mosaic_0001>
module attributes {stable_mosaic.version = 11 : i64} {
  func.func @_prenorm_kernel(%arg0: i32, %arg1: memref<128x128xf32, #tpu.memory_space<vmem>>, %arg2: memref<128x128xf32, #tpu.memory_space<vmem>>, %arg3: memref<1x128xf32, #tpu.memory_space<vmem>>, %arg4: memref<128x128xf32, #tpu.memory_space<vmem>>) attributes {dimension_semantics = [#tpu.dimension_semantics<parallel>], iteration_bounds = array<i64: 4>, scalar_prefetch = 0 : i64, scratch_operands = 0 : i64, tpu.core_type = #tpu.core_type<tc>, window_params = [{transform_indices = @transform_0, window_bounds = array<i64: 128, 128>}, {pipeline_mode = #tpu.pipeline_mode<synchronous>, transform_indices = @transform_1, window_bounds = array<i64: 128, 128>}, {pipeline_mode = #tpu.pipeline_mode<synchronous>, transform_indices = @transform_2, window_bounds = array<i64: 1, 128>}, {transform_indices = @transform_3, window_bounds = array<i64: 128, 128>}]} {
    %c0 = arith.constant 0 : index
    %c0_0 = arith.constant 0 : index
    %0 = vector.load %arg1[%c0, %c0_0] : memref<128x128xf32, #tpu.memory_space<vmem>>, vector<128x128xf32>
    %cst = arith.constant dense<0.000000e+00> : vector<128xf32>
    %1 = vector.multi_reduction <add>, %0, %cst [1] : vector<128x128xf32> to vector<128xf32>
    %2 = vector.shape_cast %1 : vector<128xf32> to vector<128x1xf32>
    %cst_1 = arith.constant 2.500000e-01 : f32
    %3 = vector.broadcast %cst_1 : f32 to vector<128x1xf32>
    %4 = arith.mulf %2, %3 : vector<128x1xf32>
    %5 = arith.mulf %0, %0 : vector<128x128xf32>
    %cst_2 = arith.constant dense<0.000000e+00> : vector<128xf32>
    %6 = vector.multi_reduction <add>, %5, %cst_2 [1] : vector<128x128xf32> to vector<128xf32>
    %7 = vector.shape_cast %6 : vector<128xf32> to vector<128x1xf32>
    %cst_3 = arith.constant 2.500000e-01 : f32
    %8 = vector.broadcast %cst_3 : f32 to vector<128x1xf32>
    %9 = arith.mulf %7, %8 : vector<128x1xf32>
    %10 = arith.mulf %4, %4 : vector<128x1xf32>
    %11 = arith.subf %9, %10 : vector<128x1xf32>
    %cst_4 = arith.constant 9.99999974E-6 : f32
    %12 = vector.broadcast %cst_4 : f32 to vector<128x1xf32>
    %13 = arith.addf %11, %12 : vector<128x1xf32>
    %14 = math.rsqrt %13 : vector<128x1xf32>
    %15 = vector.broadcast %4 : vector<128x1xf32> to vector<128x128xf32>
    %16 = arith.subf %0, %15 : vector<128x128xf32>
    %17 = vector.broadcast %14 : vector<128x1xf32> to vector<128x128xf32>
    %18 = arith.mulf %16, %17 : vector<128x128xf32>
    %c0_5 = arith.constant 0 : index
    %c0_6 = arith.constant 0 : index
    %19 = vector.load %arg2[%c0_5, %c0_6] : memref<128x128xf32, #tpu.memory_space<vmem>>, vector<128x128xf32>
    %cst_7 = arith.constant dense<0.000000e+00> : vector<128x128xf32>
    %20 = tpu.matmul %18, %19, %cst_7 {dimension_numbers = #tpu.dot_dimension_numbers<[1], [0], [0], [1], [0, 0, 1, 1], [], []>} : vector<128x128xf32>, vector<128x128xf32>, vector<128x128xf32> -> vector<128x128xf32>
    %c0_8 = arith.constant 0 : index
    %c0_9 = arith.constant 0 : index
    %21 = vector.load %arg3[%c0_8, %c0_9] : memref<1x128xf32, #tpu.memory_space<vmem>>, vector<1x128xf32>
    %22 = vector.broadcast %21 : vector<1x128xf32> to vector<128x128xf32>
    %23 = arith.addf %20, %22 : vector<128x128xf32>
    %c0_10 = arith.constant 0 : index
    %c0_11 = arith.constant 0 : index
    %24 = vector.load %arg4[%c0_10, %c0_11] : memref<128x128xf32, #tpu.memory_space<vmem>>, vector<128x128xf32>
    tpu.vector_store %arg4[%c0_10, %c0_11], %23 {strides = array<i32>} : memref<128x128xf32, #tpu.memory_space<vmem>>, vector<128x128xf32>,
    return
  }
  func.func @transform_0(%arg0: i32) -> (i32, i32) {
    %c0_i32 = arith.constant 0 : i32
    %c0_i32_0 = arith.constant 0 : i32
    return %arg0, %c0_i32 : i32, i32
  }
  func.func @transform_1(%arg0: i32) -> (i32, i32) {
    %c0_i32 = arith.constant 0 : i32
    %c0_i32_0 = arith.constant 0 : i32
    %c0_i32_1 = arith.constant 0 : i32
    return %c0_i32, %c0_i32_0 : i32, i32
  }
  func.func @transform_2(%arg0: i32) -> (i32, i32) {
    %c0_i32 = arith.constant 0 : i32
    %c0_i32_0 = arith.constant 0 : i32
    %c0_i32_1 = arith.constant 0 : i32
    return %c0_i32, %c0_i32_0 : i32, i32
  }
  func.func @transform_3(%arg0: i32) -> (i32, i32) {
    %c0_i32 = arith.constant 0 : i32
    %c0_i32_0 = arith.constant 0 : i32
    return %arg0, %c0_i32 : i32, i32
  }
}

</mosaic_0001>

<bundles_post_ra>
// kernel: tpu_custom_call.1
= control target key start
LH: loop header
LB: loop body
LE: loop exit
PB: predicated region body
PF: predicated region fallthrough
CT: control target
= control target key end

     0   :  { %8 = vsyncpa [#allocation3], 0  ;;  %s1499_s0 = inlined_call_operand.hbm [shape: f32[512,128], index: 0, kind: input, shape index: {}]   ;;  %s1500_s1 = inlined_call_operand.hbm [shape: f32[128,128], index: 1, kind: input, shape index: {}]   ;;  %s1501_s2 = inlined_call_operand.vmem [shape: f32[1,128], index: 2, kind: input, shape index: {}]   ;;  %s1502_s3 = inlined_call_operand.hbm [shape: f32[512,128], index: 3, kind: output, shape index: {}]  }
   0x1   :  { %10 = vsyncpa [#allocation3 + $0x1], 0 }
   0x2   :  { %11 = vsyncpa [#allocation6], 0 }
   0x3   :  { %12 = vsyncpa [#allocation4], 0 }
   0x4   :  { %14 = vsyncpa [#allocation4 + $0x1], 0  ;;  %s1116_s12 = smov 0   ;;  %s1118_s13 = smov 0  }
   0x5   :  { %s1120_s14 = smov 0   ;;  %s1122_s15 = smov 0  }
   0x6 LB: > { %s1137_s16 = sadd.s32 4294967295, %s1087_s15   ;;  %s711_s17 = sadd.s32 4294967294, %s1087_s15   ;;  %s1087_s15 = sphi %s1122_s15, %s1521_s15   ;;  %s1083_s14 = sphi %s1120_s14, %s1520_s14   ;;  %s1079_s13 = sphi %s1118_s13, %s1519_s13   ;;  %s1075_s12 = sphi %s1116_s12, %s1518_s12  }
   0x7   : > { %p40_p0 = scmp.ne.s32.totalorder %s1079_s13, %s1075_s12  ;;  %p1503_p1 = scmp.eq.s32.totalorder %s1137_s16, 0 }
   0x8   : > { %p112_p3 = scmp.eq.s32.totalorder %s711_s17, 3  ;;  %p712_p5 = scmp.ge.s32.totalorder %s1087_s15, 1 }
   0x9   : > { %p1146_p4 = por %p1503_p1, %p40_p0  ;;  %p119_p7 = scmp.lt.s32.totalorder %s1087_s15, 5 }
   0xa   : > { %p1151_p6 = por %p112_p3, %p40_p0  ;;  %s1089_s21 = smov [#allocation5]  }
   0xb   : > { %s1506_s18 = scalar_select %p1146_p4, 1, 0 }
   0xc   : > { %s1507_s19 = scalar_select %p1151_p6, 1, 0 }
   0xd   : > { %p1156_p8 = pnand %p712_p5, %p119_p7  ;;  %s131_s22 = sshll.u32 %s1089_s21, 4  ;;  %s132_s22 = int_to_ptr.vmem [resolvable:$true] %s131_s22 }
   0xe   : > { %s1169_s24 = sadd.s32 1, %s1087_s15   ;;  %s27_s25 = sadd.s32 1, %s1083_s14 }
   0xf   : > { %s1508_s20 = scalar_select %p1156_p8, 1, 0 }
  0x10   : > { %p874_p9 = pneg %p1156_p8  ;;  %s24_s26 = ssub.s32 %s1087_s15, %s1169_s24 }
  0x11   : > { %s959_s29 = scalar_lea.hbm %s1500_s1, 2048 }
  0x12   : > { %p1164_p10 = pnand %p874_p9, %p1503_p1  ;;  %p960_p11 = scmp.ne.s32.totalorder %s1500_s1, %s959_s29 }
  0x13   : > { %p966_p3 = scmp.lt.u32.totalorder %s959_s29, %s1500_s1 }
  0x14   : > { %p961_p12 = pneg %p1164_p10 }
  0x16   : > { %p962_p13 = pnand %p961_p12, %p960_p11 }
  0x18   : > { %p963_p0 = pneg %p962_p13 }
  0x1a   : > { %p968_p5 = pnand %p966_p3, %p963_p0 }
  0x1c   : > { %971 = shalt.err (!%p968_p5)
}
  0x1d   : > { %s972_s7 = scalar_lea.vmem %s132_s22, 2048  ;;  %p980_p2 = scmp.lt.s32.totalorder %s132_s22, %s132_s22 }
  0x1e   : > { %p973_p7 = scmp.ne.s32.totalorder %s132_s22, %s972_s7  ;;  %p981_p6 = scmp.lt.s32.totalorder %s972_s7, %s972_s7 }
  0x20   : > { %p975_p9 = pnand %p973_p7, %p961_p12  ;;  %p982_p4 = por %p981_p6, %p980_p2 }
  0x22   : > { %p976_p1 = pneg %p975_p9 }
  0x24   : > { %p983_p8 = pnand %p982_p4, %p976_p1 }
  0x26   : > { %986 = shalt.err (!%p983_p8)
}
  0x27   : > { %s1090_s8 = smov 128   ;;  %s1091_s9 = smov 8  }
  0x28   : > { %877 = dma.hbm_to_vmem [thread:$0]  (!%p1164_p10), %s1500_s1, 2048, %s132_s22, [#allocation6], %s1090_s8, %s1090_s8, %s1091_s9  }
  0x29   : > { %p25_p1 = scmp.eq.s32.totalorder %s24_s26, 0  ;;  %p34_p2 = scmp.ne.s32.totalorder %s1083_s14, %s1079_s13 }
  0x2a   : > { %p35_p4 = scmp.eq.s32.totalorder %s1087_s15, 0  ;;  %p887_p6 = scmp.lt.s32.totalorder %s1087_s15, 4 }
  0x2b   : > { %s1198_s17 = scalar_select %p25_p1, %s1083_s14, %s27_s25  }
  0x2c   : > { %p36_p8 = por %p35_p4, %p34_p2  ;;  %p1510_p11 = scmp.eq.s32.totalorder %s1137_s16, 3 }
  0x2d   : > { %s148_s23 = sand.u32 1, %s1083_s14   ;;  %s728_s27 = sshll.u32 %s1087_s15, 11 }
  0x2e   : > { %p1202_p12 = por %p1510_p11, %p34_p2  ;;  %s715_s28 = sshll.u32 %s148_s23, 7 }
  0x2f   : > { %s1211_s4 = scalar_lea.hbm %s1499_s0, %s728_s27  ;;  %s152_s22 = scalar_lea.vmem [#allocation2], %s715_s28 }
  0x30   : > { %s159_s25 = sshll.u32 %s152_s22, 4  ;;  %p1213_p10 = pnand %p887_p6, %p36_p8  ;;  %s1217_s25 = int_to_ptr.vmem [resolvable:$true] %s159_s25 }
  0x31   : > { %s1219_s5 = scalar_lea.sflag [#allocation3], %s148_s23  ;;  %s987_s6 = scalar_lea.hbm %s1211_s4, 2048 }
  0x32   : > { %p988_p13 = scmp.ne.s32.totalorder %s1211_s4, %s987_s6  ;;  %p989_p0 = pneg %p1213_p10 }
  0x33   : > { %s992_s11 = scalar_lea.hbm %s1499_s0, 8192  ;;  %p993_p7 = scmp.lt.u32.totalorder %s1211_s4, %s1499_s0 }
  0x34   : > { %p990_p3 = pnand %p989_p0, %p988_p13  ;;  %p994_p9 = scmp.lt.u32.totalorder %s992_s11, %s987_s6 }
  0x35   : > { %p996_p2 = scmp.lt.u32.totalorder %s987_s6, %s1211_s4 }
  0x36   : > { %p991_p5 = pneg %p990_p3  ;;  %p995_p1 = por %p994_p9, %p993_p7 }
  0x38   : > { %p997_p4 = por %p996_p2, %p995_p1 }
  0x3a   : > { %p998_p6 = pnand %p997_p4, %p991_p5 }
  0x3c   : > { %1001 = shalt.err (!%p998_p6)
}
  0x3d   : > { %s1002_s23 = scalar_lea.vmem %s1217_s25, 2048  ;;  %s1092_s29 = smov [#allocation2]  }
  0x3e   : > { %p1003_p8 = scmp.ne.s32.totalorder %s1217_s25, %s1002_s23  ;;  %s1007_s30 = sshll.u32 %s1092_s29, 4  ;;  %s1008_s30 = int_to_ptr.vmem [resolvable:$false] %s1007_s30 }
  0x3f   : > { %s1009_s22 = scalar_lea.vmem %s1008_s30, 4096  ;;  %p1010_p3 = scmp.lt.s32.totalorder %s1217_s25, %s1008_s30 }
  0x40   : > { %p1005_p11 = pnand %p1003_p8, %p989_p0  ;;  %p1011_p7 = scmp.lt.s32.totalorder %s1009_s22, %s1002_s23 }
  0x42   : > { %p1006_p13 = pneg %p1005_p11  ;;  %p1012_p9 = por %p1011_p7, %p1010_p3 }
  0x44   : > { %p1013_p1 = pnand %p1012_p9, %p1006_p13 }
  0x46   : > { %1016 = shalt.err (!%p1013_p1)
}
  0x47   : > { %881 = dma.hbm_to_vmem [thread:$0]  (!%p1213_p10), %s1211_s4, 2048, %s1217_s25, %s1219_s5, %s1090_s8, %s1090_s8, %s1091_s9  }
  0x48   : > { %p1513_p0 = scmp.ne.s32.totalorder %s1508_s20, 0 }
  0x49   : > { %s1253_s6 = sand.u32 (!%p1513_p0), 1, %s1079_s13   ;;  %p1514_p5 = scmp.ne.s32.totalorder (!%p1513_p0), %s1506_s18, 0 }
  0x4a   : > { %171 = sbr.rel (%p1513_p0) target bundleno = 538 (0x21a), region = 32  ;;  %s719_s7 = sshll.u32 (!%p1513_p0), %s1253_s6, 7 }
  0x4b   : > { %s174_s10 = scalar_lea.sflag (!%p1513_p0), [#allocation3], %s1253_s6  ;;  %s1259_s26 = scalar_lea.vmem (!%p1513_p0), [#allocation2], %s719_s7 }
  0x51   : > { %1062 = dma.done.wait (%p1514_p5), %s174_s10, 2048  }
  0x52   : > { %1064 = vsyncadd (%p1514_p5), %s174_s10, 4294965248  ;;  %p1515_p10 = scmp.eq.s32.totalorder %s1137_s16, 0 }
  0x54   : > { %1066 = dma.done.wait (%p1515_p10), [#allocation6], 2048   ;;  %p1516_p2 = pmov %p1515_p10 }
  0x55   : > { %v1270_v0 = vld [vmem:[%s1259_s26 + $0x8] sm:$0xff]  ;;  %v1273_v1 = vld [vmem:[%s1259_s26] sm:$0xff]  ;;  %v1294_v11 = vld [vmem:[%s1259_s26 + $0x50] sm:$0xff]  ;;  %s1431_s8 = scalar_lea.vmem [#allocation7], %s719_s7  ;;  %s729_s9 = sshll.u32 %s1137_s16, 11 }
  0x56   : > { %1068 = vsyncadd (%p1516_p2), [#allocation6], 4294965248  ;;  %224 = vadd.xlane.f32.xlu1 %v1270_v0  ;;  %222 = vadd.xlane.f32.xlu0 %v1273_v1  ;;  %v1278_v2 = vld [vmem:[%s1259_s26 + $0x48] sm:$0xff]  ;;  %v1281_v3 = vld [vmem:[%s1259_s26 + $0x40] sm:$0xff]  ;;  %v270_v5 = vmul.f32 %v1273_v1, %v1273_v1  ;;  %v271_v10 = vmul.f32 %v1270_v0, %v1270_v0  ;;  %v280_v21 = vmul.f32 %v1294_v11, %v1294_v11  ;;  %s628_s4 = sshll.u32 %s1431_s8, 4  ;;  %s1450_s11 = scalar_lea.hbm %s1502_s3, %s729_s9  ;;  %s1452_s4 = int_to_ptr.vmem [resolvable:$true] %s628_s4 }
  0x57   : > { %v278_v4 = vmul.f32 %v1281_v3, %v1281_v3  ;;  %v430_v6 = vld [vmem:[#allocation5] sm:$0xff]  ;;  %v431_v7 = vld [vmem:[#allocation5 + $0x8] sm:$0xff]  ;;  %v279_v9 = vmul.f32 %v1278_v2, %v1278_v2  ;;  %v1297_v12 = vld [vmem:[%s1259_s26 + $0x10] sm:$0xff]  ;;  %s615_s16 = scalar_lea.sflag [#allocation4], %s1253_s6  ;;  %s1017_s27 = scalar_lea.vmem %s1452_s4, 2048 }
  0x58   : > { %v818_v8 = vpack.c.bf16 %v431_v7, %v430_v6  ;;  %v432_v13 = vld [vmem:[#allocation5 + $0x10] sm:$0xff]  ;;  %v433_v14 = vld [vmem:[#allocation5 + $0x18] sm:$0xff]  ;;  %v434_v18 = vld [vmem:[#allocation5 + $0x20] sm:$0xff]  ;;  %v272_v22 = vmul.f32 %v1297_v12, %v1297_v12  ;;  %p1018_p4 = scmp.ne.s32.totalorder %s1452_s4, %s1017_s27  ;;  %s1093_s28 = smov [#allocation7]  }
  0x59   : > { %v822_v15 = vpack.c.bf16 %v433_v14, %v432_v13  ;;  %v1302_v16 = vld [vmem:[%s1259_s26 + $0x58] sm:$0xff]  ;;  %v435_v19 = vld [vmem:[#allocation5 + $0x28] sm:$0xff]  ;;  %v436_v23 = vld [vmem:[#allocation5 + $0x30] sm:$0xff]  ;;  %s1021_s23 = sshll.u32 %s1093_s28, 4  ;;  %s1022_s23 = int_to_ptr.vmem [resolvable:$false] %s1021_s23 }
  0x5a   : > { %240 = vadd.xlane.f32.xlu1 %v1278_v2  ;;  %238 = vadd.xlane.f32.xlu0 %v1281_v3  ;;  %v1305_v17 = vld [vmem:[%s1259_s26 + $0x18] sm:$0xff]  ;;  %v826_v20 = vpack.c.bf16 %v435_v19, %v434_v18  ;;  %v281_v25 = vmul.f32 %v1302_v16, %v1302_v16  ;;  %v438_v28 = vld [vmem:[#allocation5 + $0x40] sm:$0xff]  ;;  %v439_v29 = vld [vmem:[#allocation5 + $0x48] sm:$0xff]  ;;  %p1019_p6 = pnand %p1018_p4, %p1202_p12  ;;  %s1023_s29 = scalar_lea.vmem %s1022_s23, 4096 }
  0x5b   : > { %819 = vmatprep.subr.bf16.mxu0 %v818_v8  ;;  %850 = vmatprep.subr.bf16.mxu1 %v818_v8  ;;  %v437_v24 = vld [vmem:[#allocation5 + $0x38] sm:$0xff]  ;;  %v273_v26 = vmul.f32 %v1305_v17, %v1305_v17  ;;  %v834_v30 = vpack.c.bf16 %v439_v29, %v438_v28  ;;  %v1318_v31 = vld [vmem:[%s1259_s26 + $0x60] sm:$0xff]  ;;  %v440_v33 = vld [vmem:[#allocation5 + $0x50] sm:$0xff]  ;;  %p1024_p11 = scmp.lt.s32.totalorder %s1452_s4, %s1022_s23  ;;  %p1025_p13 = scmp.lt.s32.totalorder %s1023_s29, %s1017_s27 }
  0x5c   : > { %821 = vmatpush3.bf16.msra.mxu0 %v818_v8  ;;  %858 = vmatpush3.bf16.msra.mxu1 %v818_v8  ;;  %v830_v27 = vpack.c.bf16 %v437_v24, %v436_v23  ;;  %v1321_v32 = vld [vmem:[%s1259_s26 + $0x20] sm:$0xff]  ;;  %v441_v34 = vld [vmem:[#allocation5 + $0x58] sm:$0xff]  ;;  %v1326_v36 = vld [vmem:[%s1259_s26 + $0x68] sm:$0xff]  ;;  %v282_v40 = vmul.f32 %v1318_v31, %v1318_v31  ;;  %p1020_p8 = pneg %p1019_p6 }
  0x5d   : > { %823 = vmatprep.subr.bf16.mxu0 %v822_v15  ;;  %851 = vmatprep.subr.bf16.mxu1 %v822_v15  ;;  %v838_v35 = vpack.c.bf16 %v441_v34, %v440_v33  ;;  %v1329_v37 = vld [vmem:[%s1259_s26 + $0x28] sm:$0xff]  ;;  %v442_v38 = vld [vmem:[#allocation5 + $0x60] sm:$0xff]  ;;  %v274_v41 = vmul.f32 %v1321_v32, %v1321_v32  ;;  %v444_v43 = vld [vmem:[#allocation5 + $0x70] sm:$0xff]  ;;  %v283_v45 = vmul.f32 %v1326_v36, %v1326_v36  ;;  %p1026_p3 = por %p1025_p13, %p1024_p11 }
  0x5e   : > { %302 = vadd.xlane.f32.xlu1 %v278_v4  ;;  %286 = vadd.xlane.f32.xlu0 %v270_v5  ;;  %v443_v39 = vld [vmem:[#allocation5 + $0x68] sm:$0xff]  ;;  %v445_v44 = vld [vmem:[#allocation5 + $0x78] sm:$0xff]  ;;  %v275_v46 = vmul.f32 %v1329_v37, %v1329_v37  ;;  %v1342_v48 = vld [vmem:[%s1259_s26 + $0x70] sm:$0xff] }
  0x5f   : > { %v842_v42 = vpack.c.bf16 %v443_v39, %v442_v38  ;;  %v846_v47 = vpack.c.bf16 %v445_v44, %v444_v43  ;;  %v1345_v49 = vld [vmem:[%s1259_s26 + $0x30] sm:$0xff]  ;;  %v1350_v50 = vld [vmem:[%s1259_s26 + $0x78] sm:$0xff]  ;;  %v284_v52 = vmul.f32 %v1342_v48, %v1342_v48  ;;  %p1027_p7 = pnand %p1026_p3, %p1020_p8 }
  0x60   : > { %825 = vmatpush3.bf16.msra.mxu0 %v822_v15  ;;  %859 = vmatpush3.bf16.msra.mxu1 %v822_v15  ;;  %v1353_v51 = vld [vmem:[%s1259_s26 + $0x38] sm:$0xff]  ;;  %v276_v53 = vmul.f32 %v1345_v49, %v1345_v49  ;;  %v285_v54 = vmul.f32 %v1350_v50, %v1350_v50 }
  0x61   : > { %827 = vmatprep.subr.bf16.mxu0 %v826_v20  ;;  %852 = vmatprep.subr.bf16.mxu1 %v826_v20  ;;  %v277_v55 = vmul.f32 %v1353_v51, %v1353_v51 }
  0x62   : > { %304 = vadd.xlane.f32.xlu1 %v279_v9  ;;  %288 = vadd.xlane.f32.xlu0 %v271_v10 }
  0x64   : > { %829 = vmatpush3.bf16.msra.mxu0 %v826_v20  ;;  %860 = vmatpush3.bf16.msra.mxu1 %v826_v20 }
  0x65   : > { %831 = vmatprep.subr.bf16.mxu0 %v830_v27  ;;  %853 = vmatprep.subr.bf16.mxu1 %v830_v27 }
  0x66   : > { %242 = vadd.xlane.f32.xlu1 %v1294_v11  ;;  %226 = vadd.xlane.f32.xlu0 %v1297_v12 }
  0x68   : > { %833 = vmatpush3.bf16.msra.mxu0 %v830_v27  ;;  %861 = vmatpush3.bf16.msra.mxu1 %v830_v27 }
  0x69   : > { %835 = vmatprep.subr.bf16.mxu0 %v834_v30  ;;  %854 = vmatprep.subr.bf16.mxu1 %v834_v30 }
  0x6a   : > { %244 = vadd.xlane.f32.xlu1 %v1302_v16  ;;  %228 = vadd.xlane.f32.xlu0 %v1305_v17 }
  0x6c   : > { %837 = vmatpush3.bf16.msra.mxu0 %v834_v30  ;;  %862 = vmatpush3.bf16.msra.mxu1 %v834_v30 }
  0x6d   : > { %839 = vmatprep.subr.bf16.mxu0 %v838_v35  ;;  %855 = vmatprep.subr.bf16.mxu1 %v838_v35 }
  0x6e   : > { %306 = vadd.xlane.f32.xlu1 %v280_v21  ;;  %290 = vadd.xlane.f32.xlu0 %v272_v22 }
  0x70   : > { %841 = vmatpush3.bf16.msra.mxu0 %v838_v35  ;;  %863 = vmatpush3.bf16.msra.mxu1 %v838_v35 }
  0x71   : > { %843 = vmatprep.subr.bf16.mxu0 %v842_v42  ;;  %856 = vmatprep.subr.bf16.mxu1 %v842_v42 }
  0x72   : > { %308 = vadd.xlane.f32.xlu1 %v281_v25  ;;  %292 = vadd.xlane.f32.xlu0 %v273_v26 }
  0x74   : > { %845 = vmatpush3.bf16.msra.mxu0 %v842_v42  ;;  %864 = vmatpush3.bf16.msra.mxu1 %v842_v42 }
  0x75   : > { %847 = vmatprep.subr.bf16.mxu0 %v846_v47  ;;  %857 = vmatprep.subr.bf16.mxu1 %v846_v47 }
  0x76   : > { %246 = vadd.xlane.f32.xlu1 %v1318_v31  ;;  %230 = vadd.xlane.f32.xlu0 %v1321_v32 }
  0x78   : > { %849 = vmatpush3.bf16.msra.mxu0 %v846_v47  ;;  %865 = vmatpush3.bf16.msra.mxu1 %v846_v47 }
  0x7a   : > { %248 = vadd.xlane.f32.xlu1 %v1326_v36  ;;  %232 = vadd.xlane.f32.xlu0 %v1329_v37 }
  0x7e   : > { %310 = vadd.xlane.f32.xlu1 %v282_v40  ;;  %294 = vadd.xlane.f32.xlu0 %v274_v41 }
  0x82   : > { %312 = vadd.xlane.f32.xlu1 %v283_v45  ;;  %296 = vadd.xlane.f32.xlu0 %v275_v46 }
  0x86   : > { %250 = vadd.xlane.f32.xlu1 %v1342_v48  ;;  %234 = vadd.xlane.f32.xlu0 %v1345_v49 }
  0x8a   : > { %252 = vadd.xlane.f32.xlu1 %v1350_v50  ;;  %236 = vadd.xlane.f32.xlu0 %v1353_v51 }
  0x8e   : > { %314 = vadd.xlane.f32.xlu1 %v284_v52  ;;  %298 = vadd.xlane.f32.xlu0 %v276_v53 }
  0x92   : > { %316 = vadd.xlane.f32.xlu1 %v285_v54  ;;  %300 = vadd.xlane.f32.xlu0 %v277_v55 }
  0xe3   : > { %v225_v56 = vpop.xlane.xlu1 %224  ;;  %v223_v57 = vpop.xlane.xlu0 %222 }
  0xe4   : > { %v254_v60 = vmul.f32 0.25, %v223_v57  ;;  %v1365_v62 = vmul.f32 0.25, %v225_v56 }
  0xe6   : > { %v334_v6 = vmul.f32 %v254_v60, %v254_v60  ;;  %v335_v14 = vmul.f32 %v1365_v62, %v1365_v62  ;;  %v398_v42 = vsub.f32 %v1273_v1, %v254_v60 }
  0xe7   : > { %v241_v58 = vpop.xlane.xlu1 %240  ;;  %v239_v59 = vpop.xlane.xlu0 %238 }
  0xe8   : > { %v262_v61 = vmul.f32 0.25, %v239_v59  ;;  %v263_v63 = vmul.f32 0.25, %v241_v58  ;;  %v399_v58 = vsub.f32 %v1270_v0, %v1365_v62 }
  0xea   : > { %v342_v7 = vmul.f32 %v262_v61, %v262_v61  ;;  %v343_v15 = vmul.f32 %v263_v63, %v263_v63  ;;  %v406_v43 = vsub.f32 %v1281_v3, %v262_v61  ;;  %v407_v1 = vsub.f32 %v1278_v2, %v263_v63 }
  0xeb   : > { %v303_v4 = vpop.xlane.xlu1 %302  ;;  %v287_v5 = vpop.xlane.xlu0 %286 }
  0xec   : > { %v326_v8 = vmul.f32 0.25, %v303_v4  ;;  %v318_v9 = vmul.f32 0.25, %v287_v5 }
  0xee   : > { %v358_v10 = vsub.f32 %v326_v8, %v342_v7  ;;  %v350_v13 = vsub.f32 %v318_v9, %v334_v6 }
  0xef   : > { %v305_v18 = vpop.xlane.xlu1 %304  ;;  %v289_v19 = vpop.xlane.xlu0 %288 }
  0xf0   : > { %v374_v20 = vadd.f32 1e-05, %v358_v10  ;;  %v366_v21 = vadd.f32 1e-05, %v350_v13  ;;  %v327_v22 = vmul.f32 0.25, %v305_v18  ;;  %v319_v23 = vmul.f32 0.25, %v289_v19 }
  0xf2   : > { %927 = vrsqrt.f32 %v374_v20  ;;  %v359_v24 = vsub.f32 %v327_v22, %v343_v15  ;;  %v351_v25 = vsub.f32 %v319_v23, %v335_v14 }
  0xf3   : > { %929 = vrsqrt.f32 %v366_v21  ;;  %v243_v26 = vpop.xlane.xlu1 %242  ;;  %v227_v27 = vpop.xlane.xlu0 %226 }
  0xf4   : > { %v375_v28 = vadd.f32 1e-05, %v359_v24  ;;  %v367_v29 = vadd.f32 1e-05, %v351_v25  ;;  %v1369_v34 = vmul.f32 0.25, %v243_v26  ;;  %v1371_v35 = vmul.f32 0.25, %v227_v27 }
  0xf6   : > { %931 = vrsqrt.f32 %v375_v28  ;;  %v344_v45 = vmul.f32 %v1369_v34, %v1369_v34  ;;  %v336_v46 = vmul.f32 %v1371_v35, %v1371_v35  ;;  %v408_v22 = vsub.f32 %v1294_v11, %v1369_v34 }
  0xf7   : > { %933 = vrsqrt.f32 %v367_v29  ;;  %v245_v30 = vpop.xlane.xlu1 %244  ;;  %v229_v33 = vpop.xlane.xlu0 %228  ;;  %v400_v23 = vsub.f32 %v1297_v12, %v1371_v35 }
  0xf8   : > { %v1373_v38 = vmul.f32 0.25, %v245_v30  ;;  %v1375_v39 = vmul.f32 0.25, %v229_v33 }
  0xfa   : > { %v345_v3 = vmul.f32 %v1373_v38, %v1373_v38  ;;  %v337_v59 = vmul.f32 %v1375_v39, %v1375_v39  ;;  %v409_v35 = vsub.f32 %v1302_v16, %v1373_v38 }
  0xfb   : > { %v307_v40 = vpop.xlane.xlu1 %306  ;;  %v291_v41 = vpop.xlane.xlu0 %290 }
  0xfc   : > { %v928_v44 = vpop.eup %927  ;;  %v328_v47 = vmul.f32 0.25, %v307_v40  ;;  %v320_v52 = vmul.f32 0.25, %v291_v41 }
  0xfd   : > { %v930_v53 = vpop.eup %929  ;;  %v422_v54 = vmul.f32 %v928_v44, %v406_v43  ;;  %v401_v43 = vsub.f32 %v1305_v17, %v1375_v39 }
  0xfe   : > { %v360_v55 = vsub.f32 %v328_v47, %v344_v45  ;;  %v352_v56 = vsub.f32 %v320_v52, %v336_v46  ;;  %v414_v57 = vmul.f32 %v930_v53, %v398_v42 }
  0xff   : > { %v309_v60 = vpop.xlane.xlu1 %308  ;;  %806 = vmatprep.mubr.f32.mxu1 %v422_v54  ;;  %v293_v61 = vpop.xlane.xlu0 %292 }
 0x100   : > { %v932_v4 = vpop.eup %931  ;;  %v376_v5 = vadd.f32 1e-05, %v360_v55  ;;  %v368_v6 = vadd.f32 1e-05, %v352_v56  ;;  %v329_v7 = vmul.f32 0.25, %v309_v60  ;;  %794 = vmatprep.mubr.f32.mxu0 %v414_v57  ;;  %v321_v8 = vmul.f32 0.25, %v293_v61 }
 0x101   : > { %v934_v9 = vpop.eup %933  ;;  %v423_v10 = vmul.f32 %v932_v4, %v407_v1 }
 0x102   : > { %935 = vrsqrt.f32 %v376_v5  ;;  %v361_v0 = vsub.f32 %v329_v7, %v345_v3  ;;  %v353_v2 = vsub.f32 %v321_v8, %v337_v59  ;;  %v415_v62 = vmul.f32 %v934_v9, %v399_v58 }
 0x103   : > { %937 = vrsqrt.f32 %v368_v6  ;;  %v247_v63 = vpop.xlane.xlu1 %246  ;;  %807 = vmatmul.mubr.f32.vlgmr.msra.gmra.mrb[0].mxu1 %v423_v10  ;;  %v231_v13 = vpop.xlane.xlu0 %230 }
 0x104   : > { %v377_v14 = vadd.f32 1e-05, %v361_v0  ;;  %v369_v15 = vadd.f32 1e-05, %v353_v2  ;;  %795 = vmatmul.mubr.f32.vlgmr.msra.gmra.mrb[0].mxu0 %v415_v62  ;;  %v1390_v20 = vmul.f32 0.25, %v247_v63  ;;  %v1392_v21 = vmul.f32 0.25, %v231_v13 }
 0x106   : > { %939 = vrsqrt.f32 %v377_v14  ;;  %v346_v29 = vmul.f32 %v1390_v20, %v1390_v20  ;;  %v338_v30 = vmul.f32 %v1392_v21, %v1392_v21  ;;  %v410_v6 = vsub.f32 %v1318_v31, %v1390_v20 }
 0x107   : > { %941 = vrsqrt.f32 %v369_v15  ;;  %v249_v18 = vpop.xlane.xlu1 %248  ;;  %v233_v19 = vpop.xlane.xlu0 %232  ;;  %v402_v7 = vsub.f32 %v1321_v32, %v1392_v21 }
 0x108   : > { %v1398_v24 = vmul.f32 0.25, %v249_v18  ;;  %v1400_v25 = vmul.f32 0.25, %v233_v19 }
 0x10a   : > { %v347_v44 = vmul.f32 %v1398_v24, %v1398_v24  ;;  %v339_v45 = vmul.f32 %v1400_v25, %v1400_v25  ;;  %v411_v31 = vsub.f32 %v1326_v36, %v1398_v24  ;;  %v403_v32 = vsub.f32 %v1329_v37, %v1400_v25 }
 0x10b   : > { %v311_v26 = vpop.xlane.xlu1 %310  ;;  %v295_v27 = vpop.xlane.xlu0 %294 }
 0x10c   : > { %v936_v28 = vpop.eup %935  ;;  %v330_v33 = vmul.f32 0.25, %v311_v26  ;;  %v322_v40 = vmul.f32 0.25, %v295_v27 }
 0x10d   : > { %v938_v41 = vpop.eup %937  ;;  %v424_v11 = vmul.f32 %v936_v28, %v408_v22 }
 0x10e   : > { %v362_v34 = vsub.f32 %v330_v33, %v346_v29  ;;  %v354_v42 = vsub.f32 %v322_v40, %v338_v30  ;;  %v416_v12 = vmul.f32 %v938_v41, %v400_v23 }
 0x10f   : > { %v313_v46 = vpop.xlane.xlu1 %312  ;;  %809 = vmatprep.mubr.f32.mxu1 %v424_v11  ;;  %v297_v47 = vpop.xlane.xlu0 %296 }
 0x110   : > { %v940_v52 = vpop.eup %939  ;;  %v378_v53 = vadd.f32 1e-05, %v362_v34  ;;  %v370_v54 = vadd.f32 1e-05, %v354_v42  ;;  %v331_v55 = vmul.f32 0.25, %v313_v46  ;;  %797 = vmatprep.mubr.f32.mxu0 %v416_v12  ;;  %v323_v56 = vmul.f32 0.25, %v297_v47 }
 0x111   : > { %v942_v57 = vpop.eup %941  ;;  %v425_v16 = vmul.f32 %v940_v52, %v409_v35 }
 0x112   : > { %943 = vrsqrt.f32 %v378_v53  ;;  %v363_v38 = vsub.f32 %v331_v55, %v347_v44  ;;  %v355_v17 = vsub.f32 %v323_v56, %v339_v45  ;;  %v417_v39 = vmul.f32 %v942_v57, %v401_v43 }
 0x113   : > { %945 = vrsqrt.f32 %v370_v54  ;;  %v251_v58 = vpop.xlane.xlu1 %250  ;;  %810 = vmatmul.mubr.f32.gmra.mrb[2].mxu1 %v425_v16  ;;  %v235_v1 = vpop.xlane.xlu0 %234 }
 0x114   : > { %v379_v3 = vadd.f32 1e-05, %v363_v38  ;;  %v371_v59 = vadd.f32 1e-05, %v355_v17  ;;  %798 = vmatmul.mubr.f32.gmra.mrb[2].mxu0 %v417_v39  ;;  %v268_v4 = vmul.f32 0.25, %v251_v58  ;;  %v260_v5 = vmul.f32 0.25, %v235_v1 }
 0x116   : > { %947 = vrsqrt.f32 %v379_v3  ;;  %v348_v62 = vmul.f32 %v268_v4, %v268_v4  ;;  %v340_v63 = vmul.f32 %v260_v5, %v260_v5  ;;  %v412_v25 = vsub.f32 %v1342_v48, %v268_v4  ;;  %v722_v48 = vld [vmem:[%s1501_s2] ss:$0 sm:$0xff] }
 0x117   : > { %949 = vrsqrt.f32 %v371_v59  ;;  %v253_v60 = vpop.xlane.xlu1 %252  ;;  %v237_v61 = vpop.xlane.xlu0 %236  ;;  %v404_v35 = vsub.f32 %v1345_v49, %v260_v5 }
 0x118   : > { %v269_v8 = vmul.f32 0.25, %v253_v60  ;;  %v261_v9 = vmul.f32 0.25, %v237_v61 }
 0x11a   : > { %v349_v20 = vmul.f32 %v269_v8, %v269_v8  ;;  %v341_v21 = vmul.f32 %v261_v9, %v261_v9  ;;  %v413_v46 = vsub.f32 %v1350_v50, %v269_v8  ;;  %v405_v52 = vsub.f32 %v1353_v51, %v261_v9 }
 0x11b   : > { %v315_v10 = vpop.xlane.xlu1 %314  ;;  %v299_v0 = vpop.xlane.xlu0 %298 }
 0x11c   : > { %v944_v2 = vpop.eup %943  ;;  %v332_v13 = vmul.f32 0.25, %v315_v10  ;;  %v324_v14 = vmul.f32 0.25, %v299_v0 }
 0x11d   : > { %v946_v15 = vpop.eup %945  ;;  %v426_v18 = vmul.f32 %v944_v2, %v410_v6 }
 0x11e   : > { %v364_v19 = vsub.f32 %v332_v13, %v348_v62  ;;  %v356_v22 = vsub.f32 %v324_v14, %v340_v63  ;;  %v418_v23 = vmul.f32 %v946_v15, %v402_v7 }
 0x11f   : > { %v317_v26 = vpop.xlane.xlu1 %316  ;;  %812 = vmatprep.mubr.f32.mxu1 %v426_v18  ;;  %v301_v27 = vpop.xlane.xlu0 %300 }
 0x120   : > { %v948_v28 = vpop.eup %947  ;;  %v380_v29 = vadd.f32 1e-05, %v364_v19  ;;  %v372_v30 = vadd.f32 1e-05, %v356_v22  ;;  %v333_v33 = vmul.f32 0.25, %v317_v26  ;;  %800 = vmatprep.mubr.f32.mxu0 %v418_v23  ;;  %v325_v40 = vmul.f32 0.25, %v301_v27 }
 0x121   : > { %v950_v41 = vpop.eup %949  ;;  %v427_v11 = vmul.f32 %v948_v28, %v411_v31 }
 0x122   : > { %951 = vrsqrt.f32 %v380_v29  ;;  %v365_v34 = vsub.f32 %v333_v33, %v349_v20  ;;  %v357_v42 = vsub.f32 %v325_v40, %v341_v21  ;;  %v419_v36 = vmul.f32 %v950_v41, %v403_v32 }
 0x123   : > { %953 = vrsqrt.f32 %v372_v30  ;;  %813 = vmatmul.mubr.f32.gmra.mrb[4].mxu1 %v427_v11 }
 0x124   : > { %v381_v37 = vadd.f32 1e-05, %v365_v34  ;;  %v373_v24 = vadd.f32 1e-05, %v357_v42  ;;  %801 = vmatmul.mubr.f32.gmra.mrb[4].mxu0 %v419_v36 }
 0x126   : > { %955 = vrsqrt.f32 %v381_v37 }
 0x127   : > { %957 = vrsqrt.f32 %v373_v24 }
 0x12c   : > { %v952_v12 = vpop.eup %951 }
 0x12d   : > { %v954_v43 = vpop.eup %953  ;;  %v428_v44 = vmul.f32 %v952_v12, %v412_v25 }
 0x12e   : > { %v420_v45 = vmul.f32 %v954_v43, %v404_v35 }
 0x12f   : > { %815 = vmatprep.mubr.f32.mxu1 %v428_v44 }
 0x130   : > { %v956_v47 = vpop.eup %955  ;;  %803 = vmatprep.mubr.f32.mxu0 %v420_v45 }
 0x131   : > { %v958_v53 = vpop.eup %957  ;;  %v429_v54 = vmul.f32 %v956_v47, %v413_v46 }
 0x132   : > { %v421_v55 = vmul.f32 %v958_v53, %v405_v52 }
 0x133   : > { %816 = vmatmul.mubr.f32.gmra.mrb[6].mxu1 %v429_v54 }
 0x134   : > { %804 = vmatmul.mubr.f32.gmra.mrb[6].mxu0 %v421_v55 }
 0x1d6   : > { %v808_v49 = vpop.f32.mrb[0].mxu1 }
 0x1d7   : > { %v796_v56 = vpop.f32.mrb[0].mxu0  ;;  %v565_v57 = vadd.f32 %v808_v49, %v722_v48  ;;  %v559_v16 = vpop.f32.mrb[1].mxu1 }
 0x1d8   : > { %v525_v50 = vadd.f32 %v796_v56, %v722_v48  ;;  %v519_v38 = vpop.f32.mrb[1].mxu0  ;;  %v560_v17 = vadd.f32 %v722_v48, %v559_v16 }
 0x1d9   : > { %607 = vst [vmem:[%s1431_s8 + $0x48] sm:$0xff] %v565_v57  ;;  %v520_v51 = vadd.f32 %v722_v48, %v519_v38 }
 0x1da   : > { %599 = vst [vmem:[%s1431_s8 + $0x8] sm:$0xff] %v525_v50  ;;  %606 = vst [vmem:[%s1431_s8 + $0x40] sm:$0xff] %v560_v17 }
 0x1db   : > { %598 = vst [vmem:[%s1431_s8] sm:$0xff] %v520_v51 }
 0x1e6   : > { %v811_v39 = vpop.f32.mrb[2].mxu1 }
 0x1e7   : > { %v799_v58 = vpop.f32.mrb[2].mxu0  ;;  %v575_v1 = vadd.f32 %v811_v39, %v722_v48  ;;  %v569_v3 = vpop.f32.mrb[3].mxu1 }
 0x1e8   : > { %v535_v59 = vadd.f32 %v799_v58, %v722_v48  ;;  %v529_v60 = vpop.f32.mrb[3].mxu0  ;;  %v570_v61 = vadd.f32 %v722_v48, %v569_v3 }
 0x1e9   : > { %609 = vst [vmem:[%s1431_s8 + $0x58] sm:$0xff] %v575_v1  ;;  %v530_v4 = vadd.f32 %v722_v48, %v529_v60 }
 0x1ea   : > { %601 = vst [vmem:[%s1431_s8 + $0x18] sm:$0xff] %v535_v59  ;;  %608 = vst [vmem:[%s1431_s8 + $0x50] sm:$0xff] %v570_v61 }
 0x1eb   : > { %600 = vst [vmem:[%s1431_s8 + $0x10] sm:$0xff] %v530_v4 }
 0x1f6   : > { %v814_v5 = vpop.f32.mrb[4].mxu1 }
 0x1f7   : > { %v802_v6 = vpop.f32.mrb[4].mxu0  ;;  %v585_v7 = vadd.f32 %v814_v5, %v722_v48  ;;  %v579_v8 = vpop.f32.mrb[5].mxu1 }
 0x1f8   : > { %v545_v9 = vadd.f32 %v802_v6, %v722_v48  ;;  %v539_v10 = vpop.f32.mrb[5].mxu0  ;;  %v580_v0 = vadd.f32 %v722_v48, %v579_v8 }
 0x1f9   : > { %611 = vst [vmem:[%s1431_s8 + $0x68] sm:$0xff] %v585_v7  ;;  %v540_v2 = vadd.f32 %v722_v48, %v539_v10 }
 0x1fa   : > { %603 = vst [vmem:[%s1431_s8 + $0x28] sm:$0xff] %v545_v9  ;;  %610 = vst [vmem:[%s1431_s8 + $0x60] sm:$0xff] %v580_v0 }
 0x1fb   : > { %602 = vst [vmem:[%s1431_s8 + $0x20] sm:$0xff] %v540_v2 }
 0x206   : > { %v817_v62 = vpop.f32.mrb[6].mxu1 }
 0x207   : > { %v805_v63 = vpop.f32.mrb[6].mxu0  ;;  %v595_v13 = vadd.f32 %v817_v62, %v722_v48  ;;  %v589_v14 = vpop.f32.mrb[7].mxu1 }
 0x208   : > { %v555_v15 = vadd.f32 %v805_v63, %v722_v48  ;;  %v549_v18 = vpop.f32.mrb[7].mxu0  ;;  %v590_v19 = vadd.f32 %v722_v48, %v589_v14 }
 0x209   : > { %613 = vst [vmem:[%s1431_s8 + $0x78] sm:$0xff] %v595_v13  ;;  %v550_v22 = vadd.f32 %v722_v48, %v549_v18 }
 0x20a   : > { %605 = vst [vmem:[%s1431_s8 + $0x38] sm:$0xff] %v555_v15  ;;  %612 = vst [vmem:[%s1431_s8 + $0x70] sm:$0xff] %v590_v19 }
 0x20b   : > { %604 = vst [vmem:[%s1431_s8 + $0x30] sm:$0xff] %v550_v22 }
 0x20c   : > { %1030 = shalt.err (!%p1027_p7)
}
 0x20d   : > { %s1031_s30 = scalar_lea.hbm %s1450_s11, 2048  ;;  %s1035_s10 = scalar_lea.hbm %s1502_s3, 8192 }
 0x20e   : > { %p1032_p9 = scmp.ne.s32.totalorder %s1450_s11, %s1031_s30  ;;  %p1036_p5 = scmp.lt.u32.totalorder %s1450_s11, %s1502_s3 }
 0x20f   : > { %p1037_p10 = scmp.lt.u32.totalorder %s1035_s10, %s1031_s30  ;;  %p1039_p4 = scmp.lt.u32.totalorder %s1031_s30, %s1450_s11 }
 0x210   : > { %p1033_p1 = pnand %p1032_p9, %p1202_p12 }
 0x211   : > { %p1038_p2 = por %p1037_p10, %p1036_p5 }
 0x212   : > { %p1034_p0 = pneg %p1033_p1 }
 0x213   : > { %p1040_p6 = por %p1039_p4, %p1038_p2 }
 0x215   : > { %p1041_p8 = pnand %p1040_p6, %p1034_p0 }
 0x217   : > { %1044 = shalt.err (!%p1041_p8)
}
 0x218   : > { %s1094_s20 = smov 128   ;;  %s1095_s8 = smov 8  }
 0x219   : > { %872 = dma.vmem_to_hbm [thread:$0]  (%p1202_p12), %s1452_s4, 2048, %s1450_s11, %s615_s16, %s1094_s20, %s1094_s20, %s1095_s8  }
 0x21a PF: > { %p889_p11 = scmp.ge.s32.totalorder %s1087_s15, 2  ;;  %s643_s9 = sand.u32 1, %s1075_s12  }
 0x21b   : > { %p1517_p13 = scmp.ne.s32.totalorder %s1507_s19, 0  ;;  %s644_s25 = scalar_lea.sflag [#allocation4], %s643_s9 }
 0x21d   : > { %p883_p3 = pnand %p889_p11, %p1517_p13 }
 0x21f   : > { %1070 = dma.done.wait (!%p883_p3), %s644_s25, 2048  }
 0x220   : > { %1072 = vsyncadd (!%p883_p3), %s644_s25, 4294965248  ;;  %p17_p7 = scmp.ge.s32.totalorder %s1169_s24, 6   ;;  %s1518_s12 = smov %s1079_s13 }
 0x221   : > { %s1519_s13 = smov %s1083_s14  ;;  %s1520_s14 = smov %s1198_s17 }
 0x222   : > { %s1521_s15 = smov %s1169_s24  ;;  %19 = sbr.rel (!%p17_p7) target bundleno = 6 (0x6), region = 81 }
 0x229   :  { %649 = vsyncpa [#allocation3], 1 }
 0x22a   :  { %651 = vsyncpa [#allocation3 + $0x1], 1 }
 0x22b   :  { %652 = vsyncpa [#allocation6], 1 }
 0x22c   :  { %653 = vsyncpa [#allocation4], 1 }
 0x22d   :  { %655 = vsyncpa [#allocation4 + $0x1], 1 }

</bundles_post_ra>
